<compile_context>
chip_gen: v7x
topology: tpu7x:2x2x1
jax: 0.10.0
libtpu: 0.0.40
codegen_flags: <defaults>
</compile_context>

<pallas_src>
import functools

import jax
import jax.numpy as jnp
from jax.experimental import pallas as pl
from jax.experimental.pallas import tpu as pltpu


def _round_up(x, m):
    return ((x + m - 1) // m) * m


# ---------------------------------------------------------------------------
# Fused kernel: whole MLP in one invocation, activations never leave VMEM.
# ---------------------------------------------------------------------------
def _fused_mlp_kernel(*refs, n_layers):
    """refs = (x1, x2, w0_a, w0_b, b0, w1, b1, ..., w_{L-1}, b_{L-1}, out)."""
    x1_ref, x2_ref, w0a_ref, w0b_ref, b0_ref = refs[:5]
    o_ref = refs[-1]
    rest = refs[5:-1]  # (w_i, b_i) for layers 1 .. n_layers-1

    # Layer 0: concat fused via split weights (x @ [W0a; W0b] == x1@W0a + x2@W0b).
    h = jnp.dot(x1_ref[...], w0a_ref[...], preferred_element_type=jnp.float32)
    h = h + jnp.dot(x2_ref[...], w0b_ref[...], preferred_element_type=jnp.float32)
    h = h + b0_ref[...]
    if n_layers > 1:
        h = jnp.maximum(h, 0.0)

    # Remaining layers: chained matmuls, all resident in VMEM/vregs.
    for i in range(1, n_layers):
        w_ref = rest[2 * (i - 1)]
        b_ref = rest[2 * (i - 1) + 1]
        h = jnp.dot(h, w_ref[...], preferred_element_type=jnp.float32) + b_ref[...]
        if i != n_layers - 1:
            h = jnp.maximum(h, 0.0)

    o_ref[...] = h.astype(o_ref.dtype)


# ---------------------------------------------------------------------------
# Wrapper: pad to (8, 128)-dense shapes, call the fused kernel once, slice back.
# ---------------------------------------------------------------------------
def side_effect_dnn_predictor(params, drug_embedding1, drug_embedding2):
    """params: list of (w, b) with w: (din, dout), b: (dout,)."""
    batch, in_feats = drug_embedding1.shape
    n_layers = len(params)
    out_f = params[-1][0].shape[1]

    batch_p = _round_up(batch, 8)
    in_p = _round_up(in_feats, 128)

    x1p = jnp.pad(drug_embedding1,
                  ((0, batch_p - batch), (0, in_p - in_feats)))
    x2p = jnp.pad(drug_embedding2,
                  ((0, batch_p - batch), (0, in_p - in_feats)))

    # --- pad parameters to lane-dense shapes (zero padding is exact here) ----
    w0, b0 = params[0]
    dout0 = w0.shape[1]
    dout0_p = _round_up(dout0, 128)
    w0a = jnp.pad(w0[:in_feats], ((0, in_p - in_feats), (0, dout0_p - dout0)))
    w0b = jnp.pad(w0[in_feats:], ((0, in_p - in_feats), (0, dout0_p - dout0)))
    b0p = jnp.pad(b0.reshape(1, -1), ((0, 0), (0, dout0_p - dout0)))

    flat_params = [w0a, w0b, b0p]
    prev_p, prev = dout0_p, dout0
    for i in range(1, n_layers):
        w, b = params[i]
        din, dout = w.shape
        assert din == prev
        dout_p = _round_up(dout, 128)
        wp = jnp.pad(w, ((0, prev_p - din), (0, dout_p - dout)))
        bp = jnp.pad(b.reshape(1, -1), ((0, 0), (0, dout_p - dout)))
        flat_params += [wp, bp]
        prev_p, prev = dout_p, dout
    out_p = prev_p

    kernel = functools.partial(_fused_mlp_kernel, n_layers=n_layers)
    n_inputs = 2 + len(flat_params)

    # No grid: single invocation, whole arrays resident in VMEM (total padded
    # footprint here is well under 1 MiB, far below even v7x's 64 MiB VMEM).
    out_padded = pl.pallas_call(
        kernel,
        out_shape=jax.ShapeDtypeStruct((batch_p, out_p), jnp.float32),
        in_specs=[pl.BlockSpec(memory_space=pltpu.MemorySpace.VMEM)] * n_inputs,
        out_specs=pl.BlockSpec(memory_space=pltpu.MemorySpace.VMEM),
    )(x1p, x2p, *flat_params)

    return out_padded[:batch, :out_f]


# ---------------------------------------------------------------------------
# Parameter init (shapes mirror side_effect_DNN_predictor.__init__)
# ---------------------------------------------------------------------------
def init_params(key, in_feats, layer_list):
    """Weights stored as (in, out); PyTorch's nn.Linear stores (out, in)."""
    params = []
    dims_in = [in_feats * 2] + list(layer_list[:-1])
    for din, dout in zip(dims_in, layer_list):
        key, kw, kb = jax.random.split(key, 3)
        bound = 1.0 / jnp.sqrt(din)  # same scale as PyTorch default uniform init
        w = jax.random.uniform(kw, (din, dout), jnp.float32, -bound, bound)
        b = jax.random.uniform(kb, (dout,), jnp.float32, -bound, bound)
        params.append((w, b))
    return params


# ---------------------------------------------------------------------------
# Reference in plain JAX (sanity check)
# ---------------------------------------------------------------------------
def reference_forward(params, x1, x2):
    h = jnp.concatenate([x1, x2], axis=1)
    n = len(params)
    for i, (w, b) in enumerate(params):
        h = h @ w + b
        if i != n - 1:
            h = jnp.maximum(h, 0.0)
    return h


if __name__ == "__main__":
    key = jax.random.PRNGKey(0)

    # Small shapes consistent with the module's forward:
    batch = 2
    in_feats = 32               # each drug embedding is (batch, in_feats)
    layer_list = [64, 48, 17]   # final layer = number of side effects predicted

    k1, k2, kp = jax.random.split(key, 3)
    drug_embedding1 = jax.random.normal(k1, (batch, in_feats), jnp.float32)
    drug_embedding2 = jax.random.normal(k2, (batch, in_feats), jnp.float32)

    params = init_params(kp, in_feats, layer_list)

    # jit the whole forward so the (tiny) padding / slicing ops fuse around the
    # single fused Pallas call.
    fwd = jax.jit(side_effect_dnn_predictor)
    out = jax.block_until_ready(fwd(params, drug_embedding1, drug_embedding2))

    ref = reference_forward(params, drug_embedding1, drug_embedding2)
    assert out.shape == (batch, layer_list[-1])
    assert jnp.allclose(out, ref, atol=1e-4, rtol=1e-4), "mismatch vs reference"

    print("KERNEL_OK")
</pallas_src>

<mosaic_0001>
module attributes {stable_mosaic.version = 11 : i64} {
  func.func @_fused_mlp_kernel(%arg0: memref<8x128xf32, #tpu.memory_space<vmem>>, %arg1: memref<8x128xf32, #tpu.memory_space<vmem>>, %arg2: memref<128x128xf32, #tpu.memory_space<vmem>>, %arg3: memref<128x128xf32, #tpu.memory_space<vmem>>, %arg4: memref<1x128xf32, #tpu.memory_space<vmem>>, %arg5: memref<128x128xf32, #tpu.memory_space<vmem>>, %arg6: memref<1x128xf32, #tpu.memory_space<vmem>>, %arg7: memref<128x128xf32, #tpu.memory_space<vmem>>, %arg8: memref<1x128xf32, #tpu.memory_space<vmem>>, %arg9: memref<8x128xf32, #tpu.memory_space<vmem>>) attributes {dimension_semantics = [], scalar_prefetch = 0 : i64, scratch_operands = 0 : i64, tpu.core_type = #tpu.core_type<tc>} {
    %c0 = arith.constant 0 : index
    %c0_0 = arith.constant 0 : index
    %0 = vector.load %arg0[%c0, %c0_0] : memref<8x128xf32, #tpu.memory_space<vmem>>, vector<8x128xf32>
    %c0_1 = arith.constant 0 : index
    %c0_2 = arith.constant 0 : index
    %1 = vector.load %arg2[%c0_1, %c0_2] : memref<128x128xf32, #tpu.memory_space<vmem>>, vector<128x128xf32>
    %cst = arith.constant dense<0.000000e+00> : vector<8x128xf32>
    %2 = tpu.matmul %0, %1, %cst {dimension_numbers = #tpu.dot_dimension_numbers<[1], [0], [0], [1], [0, 0, 1, 1], [], []>} : vector<8x128xf32>, vector<128x128xf32>, vector<8x128xf32> -> vector<8x128xf32>
    %c0_3 = arith.constant 0 : index
    %c0_4 = arith.constant 0 : index
    %3 = vector.load %arg1[%c0_3, %c0_4] : memref<8x128xf32, #tpu.memory_space<vmem>>, vector<8x128xf32>
    %c0_5 = arith.constant 0 : index
    %c0_6 = arith.constant 0 : index
    %4 = vector.load %arg3[%c0_5, %c0_6] : memref<128x128xf32, #tpu.memory_space<vmem>>, vector<128x128xf32>
    %cst_7 = arith.constant dense<0.000000e+00> : vector<8x128xf32>
    %5 = tpu.matmul %3, %4, %cst_7 {dimension_numbers = #tpu.dot_dimension_numbers<[1], [0], [0], [1], [0, 0, 1, 1], [], []>} : vector<8x128xf32>, vector<128x128xf32>, vector<8x128xf32> -> vector<8x128xf32>
    %6 = arith.addf %2, %5 : vector<8x128xf32>
    %c0_8 = arith.constant 0 : index
    %c0_9 = arith.constant 0 : index
    %7 = vector.load %arg4[%c0_8, %c0_9] : memref<1x128xf32, #tpu.memory_space<vmem>>, vector<1x128xf32>
    %8 = vector.broadcast %7 : vector<1x128xf32> to vector<8x128xf32>
    %9 = arith.addf %6, %8 : vector<8x128xf32>
    %cst_10 = arith.constant 0.000000e+00 : f32
    %10 = vector.broadcast %cst_10 : f32 to vector<8x128xf32>
    %11 = arith.maximumf %9, %10 : vector<8x128xf32>
    %c0_11 = arith.constant 0 : index
    %c0_12 = arith.constant 0 : index
    %12 = vector.load %arg5[%c0_11, %c0_12] : memref<128x128xf32, #tpu.memory_space<vmem>>, vector<128x128xf32>
    %cst_13 = arith.constant dense<0.000000e+00> : vector<8x128xf32>
    %13 = tpu.matmul %11, %12, %cst_13 {dimension_numbers = #tpu.dot_dimension_numbers<[1], [0], [0], [1], [0, 0, 1, 1], [], []>} : vector<8x128xf32>, vector<128x128xf32>, vector<8x128xf32> -> vector<8x128xf32>
    %c0_14 = arith.constant 0 : index
    %c0_15 = arith.constant 0 : index
    %14 = vector.load %arg6[%c0_14, %c0_15] : memref<1x128xf32, #tpu.memory_space<vmem>>, vector<1x128xf32>
    %15 = vector.broadcast %14 : vector<1x128xf32> to vector<8x128xf32>
    %16 = arith.addf %13, %15 : vector<8x128xf32>
    %cst_16 = arith.constant 0.000000e+00 : f32
    %17 = vector.broadcast %cst_16 : f32 to vector<8x128xf32>
    %18 = arith.maximumf %16, %17 : vector<8x128xf32>
    %c0_17 = arith.constant 0 : index
    %c0_18 = arith.constant 0 : index
    %19 = vector.load %arg7[%c0_17, %c0_18] : memref<128x128xf32, #tpu.memory_space<vmem>>, vector<128x128xf32>
    %cst_19 = arith.constant dense<0.000000e+00> : vector<8x128xf32>
    %20 = tpu.matmul %18, %19, %cst_19 {dimension_numbers = #tpu.dot_dimension_numbers<[1], [0], [0], [1], [0, 0, 1, 1], [], []>} : vector<8x128xf32>, vector<128x128xf32>, vector<8x128xf32> -> vector<8x128xf32>
    %c0_20 = arith.constant 0 : index
    %c0_21 = arith.constant 0 : index
    %21 = vector.load %arg8[%c0_20, %c0_21] : memref<1x128xf32, #tpu.memory_space<vmem>>, vector<1x128xf32>
    %22 = vector.broadcast %21 : vector<1x128xf32> to vector<8x128xf32>
    %23 = arith.addf %20, %22 : vector<8x128xf32>
    %c0_22 = arith.constant 0 : index
    %c0_23 = arith.constant 0 : index
    %24 = vector.load %arg9[%c0_22, %c0_23] : memref<8x128xf32, #tpu.memory_space<vmem>>, vector<8x128xf32>
    tpu.vector_store %arg9[%c0_22, %c0_23], %23 {strides = array<i32>} : memref<8x128xf32, #tpu.memory_space<vmem>>, vector<8x128xf32>,
    return
  }
}

</mosaic_0001>

<bundles_post_ra>
// kernel: side_effect_dnn_predictor.1
= control target key start
LH: loop header
LB: loop body
LE: loop exit
PB: predicated region body
PF: predicated region fallthrough
CT: control target
= control target key end

     0   :  { %v717_v0 = vmov 0.0|0.0   ;;  %vm718_vm0 = vmmov 0   ;;  %v719_v8 = vmov 0.0   ;;  %s1020_s3 = inlined_call_operand.vmem [shape: f32[128,128], index: 3, kind: input, shape index: {}]   ;;  %s1021_s2 = inlined_call_operand.vmem [shape: f32[128,128], index: 2, kind: input, shape index: {}]   ;;  %s1022_s5 = inlined_call_operand.vmem [shape: f32[128,128], index: 5, kind: input, shape index: {}]   ;;  %s1023_s1 = inlined_call_operand.vmem [shape: f32[8,128], index: 1, kind: input, shape index: {}]   ;;  %s1024_s0 = inlined_call_operand.vmem [shape: f32[8,128], index: 0, kind: input, shape index: {}]   ;;  %s1025_s7 = inlined_call_operand.vmem [shape: f32[128,128], index: 7, kind: input, shape index: {}]   ;;  %s1026_s4 = inlined_call_operand.vmem [shape: f32[1,128], index: 4, kind: input, shape index: {}]   ;;  %s1027_s6 = inlined_call_operand.vmem [shape: f32[1,128], index: 6, kind: input, shape index: {}]   ;;  %s1028_s8 = inlined_call_operand.vmem [shape: f32[1,128], index: 8, kind: input, shape index: {}]   ;;  %s1029_s9 = inlined_call_operand.vmem [shape: f32[8,128], index: 9, kind: output, shape index: {}]  }
   0x1   :  { %618 = vmatprep.subr.bf16.mxu0 %v717_v0  ;;  %642 = vmatprep.subr.bf16.mxu1 %v717_v0  ;;  %v50_v1 = vld [vmem:[%s1020_s3] sm:$0xff]  ;;  %v51_v2 = vld [vmem:[%s1020_s3 + $0x8] sm:$0xff]  ;;  %v52_v6 = vld [vmem:[%s1020_s3 + $0x10] sm:$0xff] }
   0x2   :  { %v33_v3 = vld [vmem:[%s1021_s2] sm:$0xff]  ;;  %v619_v4 = vpack.c.bf16 %v51_v2, %v50_v1  ;;  %v34_v5 = vld [vmem:[%s1021_s2 + $0x8] sm:$0xff]  ;;  %v53_v7 = vld [vmem:[%s1020_s3 + $0x18] sm:$0xff]  ;;  %510 = vmatprep.mubr.msk.f32.mxu0 %vm718_vm0, %v719_v8  ;;  %545 = vmatprep.mubr.msk.f32.mxu1 %vm718_vm0, %v719_v8 }
   0x3   :  { %v643_v9 = vpack.c.bf16 %v34_v5, %v33_v3  ;;  %v35_v10 = vld [vmem:[%s1021_s2 + $0x10] sm:$0xff]  ;;  %v36_v11 = vld [vmem:[%s1021_s2 + $0x18] sm:$0xff]  ;;  %v622_v12 = vpack.c.bf16 %v53_v7, %v52_v6  ;;  %v54_v14 = vld [vmem:[%s1020_s3 + $0x20] sm:$0xff] }
   0x4   :  { %620 = vmatpush3.bf16.msra.mxu0 %v619_v4  ;;  %v646_v13 = vpack.c.bf16 %v36_v11, %v35_v10  ;;  %v55_v15 = vld [vmem:[%s1020_s3 + $0x28] sm:$0xff]  ;;  %v37_v16 = vld [vmem:[%s1021_s2 + $0x20] sm:$0xff]  ;;  %v56_v20 = vld [vmem:[%s1020_s3 + $0x30] sm:$0xff] }
   0x5   :  { %644 = vmatpush3.bf16.msra.mxu1 %v643_v9  ;;  %621 = vmatprep.subr.bf16.mxu0 %v717_v0  ;;  %v38_v17 = vld [vmem:[%s1021_s2 + $0x28] sm:$0xff]  ;;  %v625_v18 = vpack.c.bf16 %v55_v15, %v54_v14  ;;  %v57_v21 = vld [vmem:[%s1020_s3 + $0x38] sm:$0xff]  ;;  %v39_v22 = vld [vmem:[%s1021_s2 + $0x30] sm:$0xff] }
   0x6   :  { %645 = vmatprep.subr.bf16.mxu1 %v717_v0  ;;  %v649_v19 = vpack.c.bf16 %v38_v17, %v37_v16  ;;  %v40_v23 = vld [vmem:[%s1021_s2 + $0x38] sm:$0xff]  ;;  %v628_v24 = vpack.c.bf16 %v57_v21, %v56_v20  ;;  %v58_v26 = vld [vmem:[%s1020_s3 + $0x40] sm:$0xff]  ;;  %v59_v27 = vld [vmem:[%s1020_s3 + $0x48] sm:$0xff] }
   0x7   :  { %v652_v25 = vpack.c.bf16 %v40_v23, %v39_v22  ;;  %v41_v28 = vld [vmem:[%s1021_s2 + $0x40] sm:$0xff]  ;;  %v42_v29 = vld [vmem:[%s1021_s2 + $0x48] sm:$0xff]  ;;  %v631_v30 = vpack.c.bf16 %v59_v27, %v58_v26  ;;  %v60_v32 = vld [vmem:[%s1020_s3 + $0x50] sm:$0xff] }
   0x8   :  { %623 = vmatpush3.bf16.msra.mxu0 %v622_v12  ;;  %v655_v31 = vpack.c.bf16 %v42_v29, %v41_v28  ;;  %v61_v33 = vld [vmem:[%s1020_s3 + $0x58] sm:$0xff]  ;;  %v43_v34 = vld [vmem:[%s1021_s2 + $0x50] sm:$0xff]  ;;  %v62_v38 = vld [vmem:[%s1020_s3 + $0x60] sm:$0xff] }
   0x9   :  { %647 = vmatpush3.bf16.msra.mxu1 %v646_v13  ;;  %624 = vmatprep.subr.bf16.mxu0 %v717_v0  ;;  %v44_v35 = vld [vmem:[%s1021_s2 + $0x58] sm:$0xff]  ;;  %v634_v36 = vpack.c.bf16 %v61_v33, %v60_v32  ;;  %v63_v39 = vld [vmem:[%s1020_s3 + $0x68] sm:$0xff]  ;;  %v45_v40 = vld [vmem:[%s1021_s2 + $0x60] sm:$0xff] }
   0xa   :  { %648 = vmatprep.subr.bf16.mxu1 %v717_v0  ;;  %v658_v37 = vpack.c.bf16 %v44_v35, %v43_v34  ;;  %v46_v41 = vld [vmem:[%s1021_s2 + $0x68] sm:$0xff]  ;;  %v637_v42 = vpack.c.bf16 %v63_v39, %v62_v38  ;;  %v64_v44 = vld [vmem:[%s1020_s3 + $0x70] sm:$0xff]  ;;  %v65_v45 = vld [vmem:[%s1020_s3 + $0x78] sm:$0xff] }
   0xb   :  { %v661_v43 = vpack.c.bf16 %v46_v41, %v45_v40  ;;  %v47_v46 = vld [vmem:[%s1021_s2 + $0x70] sm:$0xff]  ;;  %v48_v47 = vld [vmem:[%s1021_s2 + $0x78] sm:$0xff]  ;;  %v640_v48 = vpack.c.bf16 %v65_v45, %v64_v44  ;;  %v215_v50 = vld [vmem:[%s1022_s5] sm:$0xff] }
   0xc   :  { %626 = vmatpush3.bf16.msra.mxu0 %v625_v18  ;;  %v664_v49 = vpack.c.bf16 %v48_v47, %v47_v46  ;;  %v216_v51 = vld [vmem:[%s1022_s5 + $0x8] sm:$0xff]  ;;  %v49_v52 = vld [vmem:[%s1023_s1] sm:$0xff]  ;;  %v217_v55 = vld [vmem:[%s1022_s5 + $0x10] sm:$0xff] }
   0xd   :  { %650 = vmatpush3.bf16.msra.mxu1 %v649_v19  ;;  %627 = vmatprep.subr.bf16.mxu0 %v717_v0  ;;  %v667_v53 = vpack.c.bf16 %v216_v51, %v215_v50  ;;  %v32_v54 = vld [vmem:[%s1024_s0] sm:$0xff]  ;;  %v218_v56 = vld [vmem:[%s1022_s5 + $0x18] sm:$0xff]  ;;  %v220_v59 = vld [vmem:[%s1022_s5 + $0x28] sm:$0xff] }
   0xe   :  { %651 = vmatprep.subr.bf16.mxu1 %v717_v0  ;;  %v670_v57 = vpack.c.bf16 %v218_v56, %v217_v55  ;;  %v219_v58 = vld [vmem:[%s1022_s5 + $0x20] sm:$0xff]  ;;  %v221_v61 = vld [vmem:[%s1022_s5 + $0x30] sm:$0xff]  ;;  %v222_v62 = vld [vmem:[%s1022_s5 + $0x38] sm:$0xff] }
   0xf   :  { %v673_v60 = vpack.c.bf16 %v220_v59, %v219_v58  ;;  %v676_v63 = vpack.c.bf16 %v222_v62, %v221_v61  ;;  %v223_v1 = vld [vmem:[%s1022_s5 + $0x40] sm:$0xff]  ;;  %v224_v2 = vld [vmem:[%s1022_s5 + $0x48] sm:$0xff]  ;;  %v225_v4 = vld [vmem:[%s1022_s5 + $0x50] sm:$0xff] }
  0x10   :  { %629 = vmatpush3.bf16.msra.mxu0 %v628_v24  ;;  %v679_v3 = vpack.c.bf16 %v224_v2, %v223_v1  ;;  %v226_v5 = vld [vmem:[%s1022_s5 + $0x58] sm:$0xff]  ;;  %v227_v7 = vld [vmem:[%s1022_s5 + $0x60] sm:$0xff]  ;;  %v229_v10 = vld [vmem:[%s1022_s5 + $0x70] sm:$0xff] }
  0x11   :  { %653 = vmatpush3.bf16.msra.mxu1 %v652_v25  ;;  %630 = vmatprep.subr.bf16.mxu0 %v717_v0  ;;  %v682_v6 = vpack.c.bf16 %v226_v5, %v225_v4  ;;  %v230_v11 = vld [vmem:[%s1022_s5 + $0x78] sm:$0xff]  ;;  %v309_v13 = vld [vmem:[%s1025_s7] sm:$0xff]  ;;  %v310_v14 = vld [vmem:[%s1025_s7 + $0x8] sm:$0xff] }
  0x12   :  { %654 = vmatprep.subr.bf16.mxu1 %v717_v0  ;;  %v688_v12 = vpack.c.bf16 %v230_v11, %v229_v10  ;;  %v311_v15 = vld [vmem:[%s1025_s7 + $0x10] sm:$0xff]  ;;  %v691_v16 = vpack.c.bf16 %v310_v14, %v309_v13  ;;  %v312_v17 = vld [vmem:[%s1025_s7 + $0x18] sm:$0xff]  ;;  %v313_v19 = vld [vmem:[%s1025_s7 + $0x20] sm:$0xff] }
  0x13   :  { %v694_v18 = vpack.c.bf16 %v312_v17, %v311_v15  ;;  %v314_v20 = vld [vmem:[%s1025_s7 + $0x28] sm:$0xff]  ;;  %v315_v22 = vld [vmem:[%s1025_s7 + $0x30] sm:$0xff]  ;;  %v316_v23 = vld [vmem:[%s1025_s7 + $0x38] sm:$0xff] }
  0x14   :  { %632 = vmatpush3.bf16.msra.mxu0 %v631_v30  ;;  %v697_v21 = vpack.c.bf16 %v314_v20, %v313_v19  ;;  %v700_v24 = vpack.c.bf16 %v316_v23, %v315_v22  ;;  %v317_v25 = vld [vmem:[%s1025_s7 + $0x40] sm:$0xff]  ;;  %v318_v26 = vld [vmem:[%s1025_s7 + $0x48] sm:$0xff]  ;;  %v319_v28 = vld [vmem:[%s1025_s7 + $0x50] sm:$0xff] }
  0x15   :  { %656 = vmatpush3.bf16.msra.mxu1 %v655_v31  ;;  %633 = vmatprep.subr.bf16.mxu0 %v717_v0  ;;  %v703_v27 = vpack.c.bf16 %v318_v26, %v317_v25  ;;  %v320_v29 = vld [vmem:[%s1025_s7 + $0x58] sm:$0xff]  ;;  %v321_v31 = vld [vmem:[%s1025_s7 + $0x60] sm:$0xff]  ;;  %v322_v32 = vld [vmem:[%s1025_s7 + $0x68] sm:$0xff] }
  0x16   :  { %657 = vmatprep.subr.bf16.mxu1 %v717_v0  ;;  %v706_v30 = vpack.c.bf16 %v320_v29, %v319_v28  ;;  %v709_v33 = vpack.c.bf16 %v322_v32, %v321_v31  ;;  %v408_v44 = vld [vmem:[%s1027_s6] ss:$0 sm:$0xff] }
  0x18   :  { %635 = vmatpush3.bf16.msra.mxu0 %v634_v36  ;;  %v407_v36 = vld [vmem:[%s1026_s4] ss:$0 sm:$0xff] }
  0x19   :  { %659 = vmatpush3.bf16.msra.mxu1 %v658_v37  ;;  %636 = vmatprep.subr.bf16.mxu0 %v717_v0 }
  0x1a   :  { %660 = vmatprep.subr.bf16.mxu1 %v717_v0 }
  0x1c   :  { %638 = vmatpush3.bf16.msra.mxu0 %v637_v42  ;;  %v323_v42 = vld [vmem:[%s1025_s7 + $0x70] sm:$0xff] }
  0x1d   :  { %662 = vmatpush3.bf16.msra.mxu1 %v661_v43  ;;  %639 = vmatprep.subr.bf16.mxu0 %v717_v0 }
  0x1e   :  { %663 = vmatprep.subr.bf16.mxu1 %v717_v0 }
  0x20   :  { %641 = vmatpush3.bf16.msra.mxu0 %v640_v48 }
  0x21   :  { %665 = vmatpush3.bf16.msra.mxu1 %v664_v49  ;;  %666 = vmatprep.subr.bf16.mxu0 %v717_v0  ;;  %v409_v49 = vld [vmem:[%s1028_s8] ss:$0 sm:$0xff] }
  0x22   :  { %690 = vmatprep.subr.bf16.mxu1 %v717_v0 }
  0x23   :  { %511 = vmatmul.mubr.f32.vlgmr.msra.gmra.mrb[0].mxu0 %v49_v52 }
  0x24   :  { %546 = vmatmul.mubr.f32.vlgmr.msra.gmra.mrb[0].mxu1 %v32_v54  ;;  %668 = vmatpush3.bf16.msra.mxu0 %v667_v53 }
  0x25   :  { %669 = vmatprep.subr.bf16.mxu0 %v717_v0  ;;  %580 = vmatprep.mubr.msk.f32.mxu0 %vm718_vm0, %v719_v8 }
  0x26   :  { %615 = vmatprep.mubr.msk.f32.mxu1 %vm718_vm0, %v719_v8  ;;  %v228_v8 = vld [vmem:[%s1022_s5 + $0x68] sm:$0xff]  ;;  %692 = vmatpush3.bf16.msra.mxu1 %v691_v16 }
  0x27   :  { %v685_v9 = vpack.c.bf16 %v228_v8, %v227_v7  ;;  %693 = vmatprep.subr.bf16.mxu1 %v717_v0 }
  0x28   :  { %671 = vmatpush3.bf16.msra.mxu0 %v670_v57 }
  0x29   :  { %672 = vmatprep.subr.bf16.mxu0 %v717_v0 }
  0x2a   :  { %695 = vmatpush3.bf16.msra.mxu1 %v694_v18 }
  0x2b   :  { %696 = vmatprep.subr.bf16.mxu1 %v717_v0 }
  0x2c   :  { %674 = vmatpush3.bf16.msra.mxu0 %v673_v60 }
  0x2d   :  { %675 = vmatprep.subr.bf16.mxu0 %v717_v0 }
  0x2e   :  { %698 = vmatpush3.bf16.msra.mxu1 %v697_v21 }
  0x2f   :  { %699 = vmatprep.subr.bf16.mxu1 %v717_v0 }
  0x30   :  { %677 = vmatpush3.bf16.msra.mxu0 %v676_v63 }
  0x31   :  { %678 = vmatprep.subr.bf16.mxu0 %v717_v0 }
  0x32   :  { %701 = vmatpush3.bf16.msra.mxu1 %v700_v24 }
  0x33   :  { %702 = vmatprep.subr.bf16.mxu1 %v717_v0 }
  0x34   :  { %680 = vmatpush3.bf16.msra.mxu0 %v679_v3 }
  0x35   :  { %681 = vmatprep.subr.bf16.mxu0 %v717_v0 }
  0x36   :  { %704 = vmatpush3.bf16.msra.mxu1 %v703_v27 }
  0x37   :  { %705 = vmatprep.subr.bf16.mxu1 %v717_v0 }
  0x38   :  { %683 = vmatpush3.bf16.msra.mxu0 %v682_v6 }
  0x39   :  { %684 = vmatprep.subr.bf16.mxu0 %v717_v0 }
  0x3a   :  { %707 = vmatpush3.bf16.msra.mxu1 %v706_v30 }
  0x3b   :  { %708 = vmatprep.subr.bf16.mxu1 %v717_v0 }
  0x3c   :  { %686 = vmatpush3.bf16.msra.mxu0 %v685_v9 }
  0x3d   :  { %687 = vmatprep.subr.bf16.mxu0 %v717_v0 }
  0x3e   :  { %710 = vmatpush3.bf16.msra.mxu1 %v709_v33 }
  0x3f   :  { %711 = vmatprep.subr.bf16.mxu1 %v717_v0  ;;  %v324_v0 = vld [vmem:[%s1025_s7 + $0x78] sm:$0xff] }
  0x40   :  { %689 = vmatpush3.bf16.msra.mxu0 %v688_v12  ;;  %v712_v43 = vpack.c.bf16 %v324_v0, %v323_v42 }
  0x42   :  { %713 = vmatpush3.bf16.msra.mxu1 %v712_v43 }
  0xf6   :  { %v132_v34 = vpop.f32.mrb[0].mxu0 }
  0xf7   :  { %v202_v35 = vpop.f32.mrb[0].mxu1  ;;  %v512_v37 = vpop.f32.mrb[1].mxu0 }
  0xf8   :  { %v203_v38 = vadd.f32 %v202_v35, %v132_v34  ;;  %v547_v39 = vpop.f32.mrb[1].mxu1 }
  0xfa   :  { %v213_v40 = vadd.f32 %v407_v36, %v203_v38 }
  0xfc   :  { %v214_v41 = vmax.f32 %v213_v40, 0.0 }
  0xfe   :  { %581 = vmatmul.mubr.f32.vlgmr.msra.gmra.mrb[2].mxu0 %v214_v41 }
 0x1d1   :  { %v304_v45 = vpop.f32.mrb[2].mxu0 }
 0x1d2   :  { %v305_v46 = vadd.f32 %v408_v44, %v304_v45  ;;  %v582_v47 = vpop.f32.mrb[3].mxu0 }
 0x1d4   :  { %v308_v48 = vmax.f32 %v305_v46, 0.0 }
 0x1d6   :  { %616 = vmatmul.mubr.f32.vlgmr.msra.gmra.mrb[2].mxu1 %v308_v48 }
 0x2a9   :  { %v398_v50 = vpop.f32.mrb[2].mxu1 }
 0x2aa   :  { %v399_v51 = vadd.f32 %v409_v49, %v398_v50  ;;  %v617_v52 = vpop.f32.mrb[3].mxu1 }
 0x2ac   :  { %402 = vst [vmem:[%s1029_s9] sm:$0xff] %v399_v51 }

</bundles_post_ra>
